<compile_context>
chip_gen: v5e
topology: v5e:2x2
jax: 0.10.0
libtpu: 0.0.40
codegen_flags: <defaults>
</compile_context>

<pallas_src>
import functools

import jax
import jax.numpy as jnp
from jax.experimental import pallas as pl
from jax.experimental.pallas import tpu as pltpu

# MXU operand dtype. bf16 per the perf review (v6e/v7x MXUs are bf16-native); the
# one-hot is exact in bf16, only the fused table@conv weight slab gets rounded.
# Set to jnp.float32 for bit-tight parity with the PyTorch float32 module.
_COMPUTE_DTYPE = jnp.bfloat16
_NEG_INF = -1e30


def _title_cnn_kernel(ids_ref, w_ref, mask_ref, bias_ref, o_ref, *, seq_len):
    """Fused embedding-gather + multi-width conv + max-pool + bias + ReLU.

    ids_ref:  (B_tile*S, k_max*vocab) int32  target one-hot column per (row, tap),
                                             broadcast across each tap's vocab block
    w_ref:    (k_max*vocab, F_pad)    bf16   W_eff[i] = table @ conv_tap_i, stacked
    mask_ref: (S, F_pad)              f32    0 where the conv window fits, -1e30 else
    bias_ref: (1, F_pad)              f32    concatenated conv biases (zero padded)
    o_ref:    (B_tile, F_pad)         f32    pooled features
    """
    rows, kv = ids_ref.shape
    f_pad = o_ref.shape[-1]
    b_tile = rows // seq_len

    # ONE (rows, k_max*vocab) compare on the VPU builds the fused one-hot.
    col = jax.lax.broadcasted_iota(jnp.int32, (rows, kv), 1)
    onehot = (ids_ref[...] == col).astype(w_ref.dtype)

    # ONE MXU push: embedding gather + every filter width + every tap at once,
    # 256-deep contraction, f32 accumulation.
    acc = jnp.dot(onehot, w_ref[...], preferred_element_type=jnp.float32)

    # Kill windows that run off the end of a title, max-pool over time (XLU
    # sublane reduce), then bias + ReLU hoisted past the max (exact: bias is
    # constant over t and relu is monotone; S >= k_max keeps the max non-empty).
    acc = acc.reshape(b_tile, seq_len, f_pad) + mask_ref[...][None, :, :]
    pooled = jnp.max(acc, axis=1)                               # (b_tile, F_pad)
    o_ref[...] = jnp.maximum(pooled + bias_ref[...], 0.0)


def _prepare_fused_weights(params, filter_sizes, k_max, f_pad):
    """Build the (k_max*vocab, F_pad) W_eff slab and the (1, F_pad) bias row."""
    table = params["embedding"].astype(jnp.float32)             # (vocab, E)
    vocab, embed = table.shape
    num_filters = params[f"conv{filter_sizes[0]}_b"].shape[0]
    blocks = []
    for i in range(k_max):
        cols = []
        for k in filter_sizes:
            if i < k:
                w = params[f"conv{k}_w"].astype(jnp.float32)    # (F, k, E)
                cols.append(w[:, i, :].T)                       # (E, F)
            else:
                cols.append(jnp.zeros((embed, num_filters), jnp.float32))
        w_tap = jnp.concatenate(cols, axis=1)                   # (E, F_total)
        blocks.append(table @ w_tap)                            # W_eff[i]: (vocab, F_total)
    w_big = jnp.concatenate(blocks, axis=0)                     # (k_max*vocab, F_total)
    f_total = w_big.shape[1]
    w_big = jnp.pad(w_big, ((0, 0), (0, f_pad - f_total))).astype(_COMPUTE_DTYPE)
    bias = jnp.concatenate(
        [params[f"conv{k}_b"] for k in filter_sizes]).astype(jnp.float32)
    bias = jnp.pad(bias, (0, f_pad - f_total))[None, :]         # (1, F_pad)
    return w_big, bias


def _prepare_mask(seq_len, filter_sizes, num_filters, f_pad):
    """(S, F_pad) additive validity mask: 0 if the window fits, -1e30 otherwise."""
    t = jnp.arange(seq_len)
    cols = []
    for k in filter_sizes:
        col = jnp.where(t <= seq_len - k, 0.0, _NEG_INF).astype(jnp.float32)
        cols.append(jnp.broadcast_to(col[:, None], (seq_len, num_filters)))
    mask = jnp.concatenate(cols, axis=1)                        # (S, F_total)
    return jnp.pad(mask, ((0, 0), (0, f_pad - mask.shape[1])))


def _pick_batch_tile(batch):
    """Batch tile: full batch for small B (block == full dim), else a multiple of 8."""
    if batch <= 64:
        return batch
    for t in (64, 32, 16, 8):
        if batch % t == 0:
            return t
    return batch


@functools.partial(jax.jit, static_argnums=(2,))
def encoder_movie_title_cnn(x, params, filter_sizes):
    """Forward pass of EncoderMoiveTitleCNN.

    x: (B, S) int32 token ids (must lie in [0, vocab); out-of-range ids silently
       map to a zero embedding, unlike nn.Embedding which would error).
    returns: (B, 1, num_filters * len(filter_sizes)) f32
    """
    B, S = x.shape
    vocab, _embed = params["embedding"].shape
    num_filters = params[f"conv{filter_sizes[0]}_b"].shape[0]
    k_max = max(filter_sizes)
    assert S >= k_max, "title length must be >= largest filter size"
    f_total = num_filters * len(filter_sizes)
    f_pad = max(128, pl.cdiv(f_total, 128) * 128)               # lane-dense output
    kv = k_max * vocab

    # Wrapper-side layout plumbing (tiny int/weight reshapes only; the embedded
    # sequence itself never round-trips HBM).
    x_flat = x.reshape(B * S).astype(jnp.int32)
    # Per-tap shifted ids with the tap's vocab-block offset baked in; roll
    # wrap-around / cross-title leakage is killed by the -1e30 window mask.
    taps = jnp.stack([jnp.roll(x_flat, -i) + i * vocab for i in range(k_max)],
                     axis=1)                                    # (B*S, k_max)
    ids_expanded = jnp.repeat(taps, vocab, axis=1)              # (B*S, k_max*vocab)

    w_big, bias = _prepare_fused_weights(params, filter_sizes, k_max, f_pad)
    mask = _prepare_mask(S, filter_sizes, num_filters, f_pad)

    b_tile = _pick_batch_tile(B)
    grid = (pl.cdiv(B, b_tile),)

    cost = pl.CostEstimate(
        flops=2 * B * S * kv * f_pad,
        transcendentals=0,
        bytes_accessed=(ids_expanded.size * 4
                        + w_big.size * w_big.dtype.itemsize
                        + mask.size * 4 + bias.size * 4 + B * f_pad * 4),
    )

    kernel = functools.partial(_title_cnn_kernel, seq_len=S)
    out = pl.pallas_call(
        kernel,
        out_shape=jax.ShapeDtypeStruct((B, f_pad), jnp.float32),
        grid_spec=pltpu.PrefetchScalarGridSpec(
            num_scalar_prefetch=0,
            grid=grid,
            in_specs=[
                pl.BlockSpec((b_tile * S, kv), lambda b: (b, 0)),   # per-tile ids
                pl.BlockSpec((kv, f_pad), lambda b: (0, 0)),        # resident weights
                pl.BlockSpec((S, f_pad), lambda b: (0, 0)),         # resident mask
                pl.BlockSpec((1, f_pad), lambda b: (0, 0)),         # resident bias
            ],
            out_specs=pl.BlockSpec((b_tile, f_pad), lambda b: (b, 0)),
        ),
        compiler_params=pltpu.CompilerParams(
            dimension_semantics=("parallel",)),
        cost_estimate=cost,
    )(ids_expanded, w_big, mask, bias)

    # dropout(0.5) in eval mode == identity; slice off lane padding; unsqueeze(1).
    return out[:, :f_total][:, None, :]


def _reference(x, params, filter_sizes):
    """Pure-JAX f32 reference mirroring the PyTorch module."""
    emb = jnp.take(params["embedding"], x, axis=0)              # (B, S, E)
    feats = []
    for k in filter_sizes:
        w = params[f"conv{k}_w"]                                # (F, k, E)
        b = params[f"conv{k}_b"]
        B, S, _E = emb.shape
        T = S - k + 1
        acc = jnp.zeros((B, T, w.shape[0]), jnp.float32)
        for i in range(k):
            acc = acc + jnp.einsum("bte,fe->btf", emb[:, i:i + T, :], w[:, i, :])
        acc = jax.nn.relu(acc + b[None, None, :])
        feats.append(jnp.max(acc, axis=1))
    return jnp.concatenate(feats, axis=1)[:, None, :]


if __name__ == "__main__":
    # Small config consistent with the module's __init__:
    #   movie_title_max (vocab) = 64, embed_com = 32, num_filters = 8,
    #   filter_sizes = (2, 3, 4); batch = 2, title length (seq) = 8.
    vocab, embed_com, num_filters = 64, 32, 8
    filter_sizes = (2, 3, 4)
    batch, seq = 2, 8

    key = jax.random.PRNGKey(0)
    k_emb, k_x, *k_convs = jax.random.split(key, 2 + 2 * len(filter_sizes))

    params = {"embedding": jax.random.normal(k_emb, (vocab, embed_com), jnp.float32)}
    for idx, k in enumerate(filter_sizes):
        kw, kb = k_convs[2 * idx], k_convs[2 * idx + 1]
        # PyTorch Conv2d weight is (F, 1, k, E); stored with the channel squeezed.
        params[f"conv{k}_w"] = 0.1 * jax.random.normal(
            kw, (num_filters, k, embed_com), jnp.float32)
        params[f"conv{k}_b"] = 0.1 * jax.random.normal(kb, (num_filters,), jnp.float32)

    x = jax.random.randint(k_x, (batch, seq), 0, vocab, dtype=jnp.int32)

    out = encoder_movie_title_cnn(x, params, filter_sizes)
    out = jax.block_until_ready(out)

    ref = _reference(x, params, filter_sizes)
    assert out.shape == (batch, 1, num_filters * len(filter_sizes)), out.shape
    # Tolerance covers the bf16 rounding of the fused table@conv weight slab
    # (MXU operands bf16, accumulation f32); set _COMPUTE_DTYPE=f32 for 1e-5 parity.
    assert jnp.allclose(out, ref, atol=3e-2, rtol=3e-2), "mismatch vs reference"

    print("KERNEL_OK")
</pallas_src>

<mosaic_0001>
module attributes {stable_mosaic.version = 11 : i64} {
  func.func @_title_cnn_kernel(%arg0: i32, %arg1: memref<16x256xi32, #tpu.memory_space<vmem>>, %arg2: memref<256x128xbf16, #tpu.memory_space<vmem>>, %arg3: memref<8x128xf32, #tpu.memory_space<vmem>>, %arg4: memref<1x128xf32, #tpu.memory_space<vmem>>, %arg5: memref<2x128xf32, #tpu.memory_space<vmem>>) attributes {dimension_semantics = [#tpu.dimension_semantics<parallel>], iteration_bounds = array<i64: 1>, scalar_prefetch = 0 : i64, scratch_operands = 0 : i64, tpu.core_type = #tpu.core_type<tc>, window_params = [{transform_indices = @transform_0, window_bounds = array<i64: 16, 256>}, {pipeline_mode = #tpu.pipeline_mode<synchronous>, transform_indices = @transform_1, window_bounds = array<i64: 256, 128>}, {pipeline_mode = #tpu.pipeline_mode<synchronous>, transform_indices = @transform_2, window_bounds = array<i64: 8, 128>}, {pipeline_mode = #tpu.pipeline_mode<synchronous>, transform_indices = @transform_3, window_bounds = array<i64: 1, 128>}, {transform_indices = @transform_4, window_bounds = array<i64: 2, 128>}]} {
    %0 = tpu.iota {dimensions = array<i32: 1>} : vector<16x256xi32>
    %c0 = arith.constant 0 : index
    %c0_0 = arith.constant 0 : index
    %1 = vector.load %arg1[%c0, %c0_0] : memref<16x256xi32, #tpu.memory_space<vmem>>, vector<16x256xi32>
    %2 = arith.cmpi eq, %1, %0 : vector<16x256xi32>
    %3 = arith.extui %2 : vector<16x256xi1> to vector<16x256xi32>
    %4 = arith.sitofp %3 : vector<16x256xi32> to vector<16x256xf32>
    %5 = arith.truncf %4 : vector<16x256xf32> to vector<16x256xbf16>
    %c0_1 = arith.constant 0 : index
    %c0_2 = arith.constant 0 : index
    %6 = vector.load %arg2[%c0_1, %c0_2] : memref<256x128xbf16, #tpu.memory_space<vmem>>, vector<256x128xbf16>
    %cst = arith.constant dense<0.000000e+00> : vector<16x128xf32>
    %7 = tpu.matmul %5, %6, %cst {dimension_numbers = #tpu.dot_dimension_numbers<[1], [0], [0], [1], [0, 0, 1, 1], [], []>} : vector<16x256xbf16>, vector<256x128xbf16>, vector<16x128xf32> -> vector<16x128xf32>
    %8 = vector.shape_cast %7 : vector<16x128xf32> to vector<2x8x128xf32>
    %c0_3 = arith.constant 0 : index
    %c0_4 = arith.constant 0 : index
    %9 = vector.load %arg3[%c0_3, %c0_4] : memref<8x128xf32, #tpu.memory_space<vmem>>, vector<8x128xf32>
    %10 = vector.shape_cast %9 : vector<8x128xf32> to vector<1x8x128xf32>
    %11 = vector.broadcast %10 : vector<1x8x128xf32> to vector<2x8x128xf32>
    %12 = arith.addf %8, %11 : vector<2x8x128xf32>
    %cst_5 = arith.constant dense<0xFF800000> : vector<2x128xf32>
    %13 = vector.multi_reduction <maximumf>, %12, %cst_5 [1] : vector<2x8x128xf32> to vector<2x128xf32>
    %c0_6 = arith.constant 0 : index
    %c0_7 = arith.constant 0 : index
    %14 = vector.load %arg4[%c0_6, %c0_7] : memref<1x128xf32, #tpu.memory_space<vmem>>, vector<1x128xf32>
    %15 = vector.broadcast %14 : vector<1x128xf32> to vector<2x128xf32>
    %16 = arith.addf %13, %15 : vector<2x128xf32>
    %cst_8 = arith.constant 0.000000e+00 : f32
    %17 = vector.broadcast %cst_8 : f32 to vector<2x128xf32>
    %18 = arith.maximumf %16, %17 : vector<2x128xf32>
    %c0_9 = arith.constant 0 : index
    %c0_10 = arith.constant 0 : index
    %19 = vector.load %arg5[%c0_9, %c0_10] : memref<2x128xf32, #tpu.memory_space<vmem>>, vector<2x128xf32>
    tpu.vector_store %arg5[%c0_9, %c0_10], %18 {strides = array<i32>} : memref<2x128xf32, #tpu.memory_space<vmem>>, vector<2x128xf32>,
    return
  }
  func.func @transform_0(%arg0: i32) -> (i32, i32) {
    %c0_i32 = arith.constant 0 : i32
    %c0_i32_0 = arith.constant 0 : i32
    return %arg0, %c0_i32 : i32, i32
  }
  func.func @transform_1(%arg0: i32) -> (i32, i32) {
    %c0_i32 = arith.constant 0 : i32
    %c0_i32_0 = arith.constant 0 : i32
    %c0_i32_1 = arith.constant 0 : i32
    return %c0_i32, %c0_i32_0 : i32, i32
  }
  func.func @transform_2(%arg0: i32) -> (i32, i32) {
    %c0_i32 = arith.constant 0 : i32
    %c0_i32_0 = arith.constant 0 : i32
    %c0_i32_1 = arith.constant 0 : i32
    return %c0_i32, %c0_i32_0 : i32, i32
  }
  func.func @transform_3(%arg0: i32) -> (i32, i32) {
    %c0_i32 = arith.constant 0 : i32
    %c0_i32_0 = arith.constant 0 : i32
    %c0_i32_1 = arith.constant 0 : i32
    return %c0_i32, %c0_i32_0 : i32, i32
  }
  func.func @transform_4(%arg0: i32) -> (i32, i32) {
    %c0_i32 = arith.constant 0 : i32
    %c0_i32_0 = arith.constant 0 : i32
    return %arg0, %c0_i32 : i32, i32
  }
}

</mosaic_0001>

<bundles_post_ra>
// kernel: encoder_movie_title_cnn.1
= control target key start
LH: loop header
LB: loop body
LE: loop exit
PB: predicated region body
PF: predicated region fallthrough
CT: control target
= control target key end

     0   :  { %s454_s0 = inlined_call_operand.vmem [shape: s32[16,256], index: 0, kind: input, shape index: {}]   ;;  %s455_s1 = inlined_call_operand.vmem [shape: bf16[256,128], index: 1, kind: input, shape index: {}]   ;;  %s456_s2 = inlined_call_operand.vmem [shape: f32[8,128], index: 2, kind: input, shape index: {}]   ;;  %s457_s3 = inlined_call_operand.vmem [shape: f32[1,128], index: 3, kind: input, shape index: {}]   ;;  %s458_s4 = inlined_call_operand.hbm [shape: f32[2,128], index: 4, kind: output, shape index: {}]  }
   0x1   :  { %v320_v0 = vld [vmem:[%s455_s1 + $0x38] sm:$0xff]  ;;  %v319_v2 = vld [vmem:[%s455_s1 + $0x30] sm:$0xff]  ;;  %v318_v4 = vld [vmem:[%s455_s1 + $0x28] sm:$0xff] }
   0x2   :  { %v328_v1 = vld [vmem:[%s455_s1 + $0x78] sm:$0xff]  ;;  %167 = vmatpush.bf16.msra.mxu0 %v320_v0  ;;  %v327_v3 = vld [vmem:[%s455_s1 + $0x70] sm:$0xff]  ;;  %v326_v5 = vld [vmem:[%s455_s1 + $0x68] sm:$0xff] }
   0x3   :  { %181 = vmatpush.bf16.msra.mxu1 %v328_v1 }
   0x6   :  { %168 = vmatpush.bf16.msra.mxu0 %v319_v2 }
   0x7   :  { %182 = vmatpush.bf16.msra.mxu1 %v327_v3 }
   0x8   :  { %9 = vsyncpa [#allocation3], 0  ;;  %v317_v6 = vld [vmem:[%s455_s1 + $0x20] sm:$0xff]  ;;  %v316_v8 = vld [vmem:[%s455_s1 + $0x18] sm:$0xff]  ;;  %v18_v10 = vlaneseq  ;;  %v358_v23 = vmov 1.0|1.0  }
   0x9   :  { %v325_v7 = vld [vmem:[%s455_s1 + $0x60] sm:$0xff]  ;;  %v324_v9 = vld [vmem:[%s455_s1 + $0x58] sm:$0xff]  ;;  %v315_v11 = vld [vmem:[%s455_s1 + $0x10] sm:$0xff]  ;;  %s232_s8 = sshll.u32 %s458_s4, 4  ;;  %vm221_vm6 = vcmask 1041409   ;;  %s233_s8 = int_to_ptr.hbm [resolvable:$true] %s232_s8 }
   0xa   :  { %169 = vmatpush.bf16.msra.mxu0 %v318_v4  ;;  %v323_v12 = vld [vmem:[%s455_s1 + $0x50] sm:$0xff]  ;;  %v19_v13 = vand.u32 127, %v18_v10  ;;  %v314_v14 = vld [vmem:[%s455_s1 + $0x8] sm:$0xff]  ;;  %v21_v16 = vld [vmem:[%s454_s0] sm:$0xff] }
   0xb   :  { %183 = vmatpush.bf16.msra.mxu1 %v326_v5  ;;  %v322_v15 = vld [vmem:[%s455_s1 + $0x48] sm:$0xff]  ;;  %v23_v17 = vld [vmem:[%s454_s0 + $0x10] sm:$0xff]  ;;  %v24_v20 = vld [vmem:[%s454_s0 + $0x18] sm:$0xff] }
   0xc   :  { %v20_v18 = vadd.s32 128, %v19_v13  ;;  %v22_v19 = vld [vmem:[%s454_s0 + $0x8] sm:$0xff]  ;;  %v313_v21 = vld [vmem:[%s455_s1] sm:$0xff]  ;;  %vm25_vm0 = vcmp.eq.s32.totalorder %v21_v16, %v19_v13  ;;  %vm27_vm1 = vcmp.eq.s32.totalorder %v23_v17, %v19_v13 }
   0xd   :  { %v321_v22 = vld [vmem:[%s455_s1 + $0x40] sm:$0xff]  ;;  %vm309_vm4 = vmpackc.low %vm27_vm1, %vm25_vm0 }
   0xe   :  { %170 = vmatpush.bf16.msra.mxu0 %v317_v6  ;;  %vm26_vm2 = vcmp.eq.s32.totalorder %v22_v19, %v20_v18  ;;  %vm28_vm3 = vcmp.eq.s32.totalorder %v24_v20, %v20_v18  ;;  %v195_v26 = vld [vmem:[%s456_s2] sm:$0xff]  ;;  %s359_s2 = smov [#allocation2]  }
   0xf   :  { %184 = vmatpush.bf16.msra.mxu1 %v325_v7  ;;  %vm311_vm5 = vmpackc.low %vm28_vm3, %vm26_vm2  ;;  %v331_v44 = vld [vmem:[%s457_s3] ss:$0 sm:$0xff]  ;;  %s230_s5 = sshll.u32 %s359_s2, 4  ;;  %s231_s5 = int_to_ptr.vmem [resolvable:$true] %s230_s5 }
  0x12   :  { %171 = vmatpush.bf16.msra.mxu0 %v316_v8 }
  0x13   :  { %185 = vmatpush.bf16.msra.mxu1 %v324_v9 }
  0x16   :  { %172 = vmatpush.bf16.msra.mxu0 %v315_v11 }
  0x17   :  { %186 = vmatpush.bf16.msra.mxu1 %v323_v12 }
  0x1a   :  { %173 = vmatpush.bf16.msra.mxu0 %v314_v14 }
  0x1b   :  { %187 = vmatpush.bf16.msra.mxu1 %v322_v15 }
  0x1e   :  { %174 = vmatpush.bf16.msra.mxu0 %v313_v21 }
  0x1f   :  { %188 = vmatpush.bf16.msra.mxu1 %v321_v22 }
  0x21   :  { %310 = vmatmul.msk.bf16.vlgmr.msra.gmra.mxu0 %vm309_vm4, %v358_v23 }
  0x22   :  { %312 = vmatmul.msk.bf16.vlgmr.msra.gmra.mxu1 %vm311_vm5, %v358_v23 }
  0x9e   :  { %v176_v24 = vpop.f32.mrf.mxu0 }
  0x9f   :  { %v190_v25 = vpop.f32.mrf.mxu1 }
  0xa0   :  { %v191_v27 = vadd.f32 %v190_v25, %v176_v24 }
  0xa2   :  { %v196_v28 = vadd.f32 %v195_v26, %v191_v27 }
  0xa4   :  { %v198_v29 = vrot.slane %v196_v28, 4 }
  0xa6   :  { %v199_v30 = vmax.f32 %v196_v28, %v198_v29  ;;  %v178_v31 = vpop.f32.mrf.mxu0 }
  0xa7   :  { %v192_v32 = vpop.f32.mrf.mxu1 }
  0xa8   :  { %v200_v33 = vrot.slane %v199_v30, 2  ;;  %v193_v34 = vadd.f32 %v192_v32, %v178_v31 }
  0xaa   :  { %v197_v35 = vadd.f32 %v195_v26, %v193_v34  ;;  %v201_v36 = vmax.f32 %v199_v30, %v200_v33 }
  0xac   :  { %v204_v37 = vrot.slane %v197_v35, 4  ;;  %v202_v39 = vrot.slane %v201_v36, 1 }
  0xae   :  { %v205_v38 = vmax.f32 %v197_v35, %v204_v37  ;;  %v203_v42 = vmax.f32 %v201_v36, %v202_v39 }
  0xb0   :  { %v206_v40 = vrot.slane %v205_v38, 2  ;;  %v214_v46 = vadd.f32 %v331_v44, %v203_v42 }
  0xb2   :  { %v207_v41 = vmax.f32 %v205_v38, %v206_v40  ;;  %v216_v49 = vmax.f32 %v214_v46, 0.0 }
  0xb4   :  { %v208_v43 = vrot.slane %v207_v41, 1 }
  0xb6   :  { %v209_v45 = vmax.f32 %v207_v41, %v208_v43 }
  0xb8   :  { %v215_v47 = vadd.f32 %v331_v44, %v209_v45 }
  0xba   :  { %v217_v48 = vmax.f32 %v215_v47, 0.0 }
  0xbc   :  { %v220_v50 = vrot.slane %v217_v48, 7 }
  0xbe   :  { %v222_v51 = vsel %vm221_vm6, %v220_v50, %v216_v49 }
  0xbf   :  { %224 = vst [vmem:[#allocation2] sm:$0x3] %v222_v51 }
  0xc0   :  { %235 = dma.vmem_to_hbm [thread:$0]  %s231_s5, 32, %s233_s8, [#allocation3]  }
  0xc1   :  { %356 = dma.done.wait [#allocation3], 32  }
  0xc2   :  { %357 = vsyncadd [#allocation3], 4294967264 }
  0xc3   :  { %240 = vsyncpa [#allocation3], 1 }

</bundles_post_ra>
